<compile_context>
chip_gen: v7x
topology: tpu7x:2x2x1
jax: 0.10.0
libtpu: 0.0.40
codegen_flags: <defaults>
</compile_context>

<pallas_src>
import math
import jax
import jax.numpy as jnp
from jax import lax
from jax.experimental import pallas as pl
from jax.experimental.pallas import tpu as pltpu


def _mha_kernel(n_heads, key_dim, val_dim, bb, n_query, graph_size):
    def kernel(q_ref, h_ref, bias_ref, wq_ref, wkv_ref, wo_ref, out_ref):
        # Whole batch block resident in VMEM; all shapes are static.
        q2 = q_ref[...]          # (bb*nq, input_dim)
        h2 = h_ref[...]          # (bb*gs, input_dim)
        bias = bias_ref[...]     # (bb*nq, gs), 0.0 or -1e30
        masked = bias < 0.0      # True == masked

        # Fused-head projections over the whole batch block: one MXU matmul for Q,
        # one for the concatenated K|V (norm_factor already folded into wq).
        Qall = jnp.dot(q2, wq_ref[...],
                       preferred_element_type=jnp.float32)   # (bb*nq, H*kd)
        KVall = jnp.dot(h2, wkv_ref[...],
                        preferred_element_type=jnp.float32)  # (bb*gs, H*(kd+vd))

        kv_off = n_heads * key_dim
        batch_outs = []
        for b in range(bb):                        # statically unrolled (bb is tiny)
            q_rows = slice(b * n_query, (b + 1) * n_query)
            h_rows = slice(b * graph_size, (b + 1) * graph_size)
            bias_b = bias[q_rows, :]
            masked_b = masked[q_rows, :]

            head_outs = []
            for hd in range(n_heads):              # statically unrolled lane slices
                Qh = Qall[q_rows, hd * key_dim:(hd + 1) * key_dim]      # (nq, kd)
                Kh = KVall[h_rows, hd * key_dim:(hd + 1) * key_dim]     # (gs, kd)
                Vh = KVall[h_rows,
                           kv_off + hd * val_dim: kv_off + (hd + 1) * val_dim]

                # Scores: contract last dims directly (no explicit K transpose).
                compat = lax.dot_general(
                    Qh, Kh, (((1,), (1,)), ((), ())),
                    preferred_element_type=jnp.float32)                 # (nq, gs)
                compat = compat + bias_b                                # masked -> ~ -1e30

                # Softmax over keys; masked lanes underflow to exactly 0 in exp.
                m = jnp.max(compat, axis=-1, keepdims=True)
                e = jnp.exp(compat - m)
                attn = e / jnp.sum(e, axis=-1, keepdims=True)
                # Matches torch's `attnc[mask] = 0` (also covers fully-masked rows).
                attn = jnp.where(masked_b, 0.0, attn)

                head_outs.append(
                    jnp.dot(attn, Vh, preferred_element_type=jnp.float32))  # (nq, vd)

            batch_outs.append(jnp.concatenate(head_outs, axis=-1))     # (nq, H*vd)

        # Single fused output projection over all batches / heads.
        heads_cat = jnp.concatenate(batch_outs, axis=0)                # (bb*nq, H*vd)
        out = jnp.dot(heads_cat, wo_ref[...],
                      preferred_element_type=jnp.float32)              # (bb*nq, ed)
        out_ref[...] = out.astype(out_ref.dtype)

    return kernel


def multi_head_attention(q, h, mask, W_query, W_key, W_val, W_out, batch_block=None):
    """Pallas forward pass. Returns (out, None, old_mask) like the torch module."""
    if h is None:
        h = q
    B, n_query, input_dim = q.shape
    _, graph_size, _ = h.shape
    n_heads, _, key_dim = W_query.shape
    val_dim = W_val.shape[-1]
    embed_dim = W_out.shape[-1]
    norm_factor = 1.0 / math.sqrt(key_dim)

    bb = B if batch_block is None else batch_block
    assert B % bb == 0, "batch_block must divide the batch size"
    num_blocks = B // bb

    # Fuse head weights: (H, in, d) -> (in, H*d), head-major along the fused axis.
    wq_flat = (jnp.transpose(W_query, (1, 0, 2))
               .reshape(input_dim, n_heads * key_dim) * norm_factor)
    wk_flat = jnp.transpose(W_key, (1, 0, 2)).reshape(input_dim, n_heads * key_dim)
    wv_flat = jnp.transpose(W_val, (1, 0, 2)).reshape(input_dim, n_heads * val_dim)
    wkv_flat = jnp.concatenate([wk_flat, wv_flat], axis=1)   # (in, H*(kd+vd))
    # torch: heads.permute(1,2,0,3).view(-1, H*vd) @ W_out.view(-1, ed)
    wo_flat = W_out.reshape(n_heads * val_dim, embed_dim)

    # Flatten batch into rows so projections are single matmuls over all batches.
    q2 = q.reshape(B * n_query, input_dim).astype(jnp.float32)
    h2 = h.reshape(B * graph_size, input_dim).astype(jnp.float32)
    # Additive mask bias: 0 for attendable, -1e30 for masked (finite -> no NaN/Inf).
    bias2 = jnp.where(mask.astype(bool), jnp.float32(-1e30),
                      jnp.float32(0.0)).reshape(B * n_query, graph_size)

    out2 = pl.pallas_call(
        _mha_kernel(n_heads, key_dim, val_dim, bb, n_query, graph_size),
        out_shape=jax.ShapeDtypeStruct((B * n_query, embed_dim), jnp.float32),
        grid_spec=pltpu.PrefetchScalarGridSpec(
            num_scalar_prefetch=0,
            grid=(num_blocks,),
            in_specs=[
                pl.BlockSpec((bb * n_query, input_dim), lambda i: (i, 0)),
                pl.BlockSpec((bb * graph_size, input_dim), lambda i: (i, 0)),
                pl.BlockSpec((bb * n_query, graph_size), lambda i: (i, 0)),
                # Weights: constant block index -> DMA'd once, resident in VMEM.
                pl.BlockSpec((input_dim, n_heads * key_dim), lambda i: (0, 0)),
                pl.BlockSpec((input_dim, n_heads * (key_dim + val_dim)),
                             lambda i: (0, 0)),
                pl.BlockSpec((n_heads * val_dim, embed_dim), lambda i: (0, 0)),
            ],
            out_specs=pl.BlockSpec((bb * n_query, embed_dim), lambda i: (i, 0)),
        ),
        compiler_params=pltpu.CompilerParams(
            dimension_semantics=("parallel",)),
    )(q2, h2, bias2, wq_flat, wkv_flat, wo_flat)

    out = out2.reshape(B, n_query, embed_dim)
    return out, None, mask.astype(jnp.bool_)


def _reference(q, h, mask, W_query, W_key, W_val, W_out):
    """Pure-JAX replica of the PyTorch forward (for validation)."""
    if h is None:
        h = q
    n_heads, input_dim, key_dim = W_query.shape
    embed_dim = W_out.shape[-1]
    norm_factor = 1.0 / math.sqrt(key_dim)
    Q = jnp.einsum('bqi,hik->hbqk', q, W_query)
    K = jnp.einsum('bgi,hik->hbgk', h, W_key)
    V = jnp.einsum('bgi,hiv->hbgv', h, W_val)
    compat = norm_factor * jnp.einsum('hbqk,hbgk->hbqg', Q, K)
    m = mask.astype(bool)[None]                       # (1,B,nq,gs) broadcast over heads
    compat = jnp.where(m, -jnp.inf, compat)
    attn = jax.nn.softmax(compat, axis=-1)
    attn = jnp.where(m, 0.0, attn)
    heads = jnp.einsum('hbqg,hbgv->hbqv', attn, V)    # (H,B,nq,vd)
    B, nq = q.shape[0], q.shape[1]
    flat = jnp.transpose(heads, (1, 2, 0, 3)).reshape(B * nq, -1)
    out = flat @ W_out.reshape(-1, embed_dim)
    return out.reshape(B, nq, embed_dim)


if __name__ == "__main__":
    # Module config: n_heads=4, input_dim=32, embed_dim=32 -> key_dim = val_dim = 8.
    n_heads, input_dim, embed_dim = 4, 32, 32
    val_dim = embed_dim // n_heads
    key_dim = val_dim
    B, n_query, graph_size = 2, 8, 16

    key = jax.random.PRNGKey(0)
    k_q, k_h, k_m, k_wq, k_wk, k_wv, k_wo = jax.random.split(key, 7)

    q = jax.random.normal(k_q, (B, n_query, input_dim), jnp.float32)
    h = jax.random.normal(k_h, (B, graph_size, input_dim), jnp.float32)
    mask = jax.random.uniform(k_m, (B, n_query, graph_size)) < 0.3
    mask = mask.at[:, :, 0].set(False)  # keep at least one attendable key per query

    # Deterministic parameter init matching torch: uniform(-stdv, stdv), stdv = 1/sqrt(size(-1)).
    def init_w(k, shape):
        stdv = 1.0 / math.sqrt(shape[-1])
        return jax.random.uniform(k, shape, jnp.float32, -stdv, stdv)

    W_query = init_w(k_wq, (n_heads, input_dim, key_dim))
    W_key = init_w(k_wk, (n_heads, input_dim, key_dim))
    W_val = init_w(k_wv, (n_heads, input_dim, val_dim))
    W_out = init_w(k_wo, (n_heads, key_dim, embed_dim))

    out, _, old_mask = multi_head_attention(q, h, mask, W_query, W_key, W_val, W_out)
    out = jax.block_until_ready(out)

    ref = _reference(q, h, mask, W_query, W_key, W_val, W_out)
    assert jnp.allclose(out, ref, atol=1e-5, rtol=1e-5), "mismatch vs reference"
    assert out.shape == (B, n_query, embed_dim)
    assert bool(jnp.all(old_mask == mask))

    print("KERNEL_OK")
</pallas_src>

<mosaic_0001>
module attributes {stable_mosaic.version = 11 : i64} {
  func.func @kernel(%arg0: i32, %arg1: memref<16x32xf32, #tpu.memory_space<vmem>>, %arg2: memref<32x32xf32, #tpu.memory_space<vmem>>, %arg3: memref<16x16xf32, #tpu.memory_space<vmem>>, %arg4: memref<32x32xf32, #tpu.memory_space<vmem>>, %arg5: memref<32x64xf32, #tpu.memory_space<vmem>>, %arg6: memref<32x32xf32, #tpu.memory_space<vmem>>, %arg7: memref<16x32xf32, #tpu.memory_space<vmem>>) attributes {dimension_semantics = [#tpu.dimension_semantics<parallel>], iteration_bounds = array<i64: 1>, scalar_prefetch = 0 : i64, scratch_operands = 0 : i64, tpu.core_type = #tpu.core_type<tc>, window_params = [{transform_indices = @transform_0, window_bounds = array<i64: 16, 32>}, {transform_indices = @transform_1, window_bounds = array<i64: 32, 32>}, {transform_indices = @transform_2, window_bounds = array<i64: 16, 16>}, {pipeline_mode = #tpu.pipeline_mode<synchronous>, transform_indices = @transform_3, window_bounds = array<i64: 32, 32>}, {pipeline_mode = #tpu.pipeline_mode<synchronous>, transform_indices = @transform_4, window_bounds = array<i64: 32, 64>}, {pipeline_mode = #tpu.pipeline_mode<synchronous>, transform_indices = @transform_5, window_bounds = array<i64: 32, 32>}, {transform_indices = @transform_6, window_bounds = array<i64: 16, 32>}]} {
    %c0 = arith.constant 0 : index
    %c0_0 = arith.constant 0 : index
    %0 = vector.load %arg1[%c0, %c0_0] : memref<16x32xf32, #tpu.memory_space<vmem>>, vector<16x32xf32>
    %c0_1 = arith.constant 0 : index
    %c0_2 = arith.constant 0 : index
    %1 = vector.load %arg2[%c0_1, %c0_2] : memref<32x32xf32, #tpu.memory_space<vmem>>, vector<32x32xf32>
    %c0_3 = arith.constant 0 : index
    %c0_4 = arith.constant 0 : index
    %2 = vector.load %arg3[%c0_3, %c0_4] : memref<16x16xf32, #tpu.memory_space<vmem>>, vector<16x16xf32>
    %cst = arith.constant 0.000000e+00 : f32
    %3 = vector.broadcast %cst : f32 to vector<16x16xf32>
    %4 = arith.cmpf olt, %2, %3 : vector<16x16xf32>
    %c0_5 = arith.constant 0 : index
    %c0_6 = arith.constant 0 : index
    %5 = vector.load %arg4[%c0_5, %c0_6] : memref<32x32xf32, #tpu.memory_space<vmem>>, vector<32x32xf32>
    %cst_7 = arith.constant dense<0.000000e+00> : vector<16x32xf32>
    %6 = tpu.matmul %0, %5, %cst_7 {dimension_numbers = #tpu.dot_dimension_numbers<[1], [0], [0], [1], [0, 0, 1, 1], [], []>} : vector<16x32xf32>, vector<32x32xf32>, vector<16x32xf32> -> vector<16x32xf32>
    %c0_8 = arith.constant 0 : index
    %c0_9 = arith.constant 0 : index
    %7 = vector.load %arg5[%c0_8, %c0_9] : memref<32x64xf32, #tpu.memory_space<vmem>>, vector<32x64xf32>
    %cst_10 = arith.constant dense<0.000000e+00> : vector<32x64xf32>
    %8 = tpu.matmul %1, %7, %cst_10 {dimension_numbers = #tpu.dot_dimension_numbers<[1], [0], [0], [1], [0, 0, 1, 1], [], []>} : vector<32x32xf32>, vector<32x64xf32>, vector<32x64xf32> -> vector<32x64xf32>
    %9 = vector.extract_strided_slice %2 {offsets = [0, 0], sizes = [8, 16], strides = [1, 1]} : vector<16x16xf32> to vector<8x16xf32>
    %10 = vector.extract_strided_slice %4 {offsets = [0, 0], sizes = [8, 16], strides = [1, 1]} : vector<16x16xi1> to vector<8x16xi1>
    %11 = vector.extract_strided_slice %6 {offsets = [0, 0], sizes = [8, 8], strides = [1, 1]} : vector<16x32xf32> to vector<8x8xf32>
    %12 = vector.extract_strided_slice %8 {offsets = [0, 0], sizes = [16, 8], strides = [1, 1]} : vector<32x64xf32> to vector<16x8xf32>
    %13 = vector.extract_strided_slice %8 {offsets = [0, 32], sizes = [16, 8], strides = [1, 1]} : vector<32x64xf32> to vector<16x8xf32>
    %cst_11 = arith.constant dense<0.000000e+00> : vector<8x16xf32>
    %14 = tpu.matmul %11, %12, %cst_11 {dimension_numbers = #tpu.dot_dimension_numbers<[1], [1], [0], [0], [0, 0, 1, 0], [], []>} : vector<8x8xf32>, vector<16x8xf32>, vector<8x16xf32> -> vector<8x16xf32>
    %15 = arith.addf %14, %9 : vector<8x16xf32>
    %cst_12 = arith.constant dense<0xFF800000> : vector<8xf32>
    %16 = vector.multi_reduction <maximumf>, %15, %cst_12 [1] : vector<8x16xf32> to vector<8xf32>
    %17 = vector.shape_cast %16 : vector<8xf32> to vector<8x1xf32>
    %18 = vector.broadcast %17 : vector<8x1xf32> to vector<8x16xf32>
    %19 = arith.subf %15, %18 : vector<8x16xf32>
    %20 = math.exp %19 : vector<8x16xf32>
    %cst_13 = arith.constant dense<0.000000e+00> : vector<8xf32>
    %21 = vector.multi_reduction <add>, %20, %cst_13 [1] : vector<8x16xf32> to vector<8xf32>
    %22 = vector.shape_cast %21 : vector<8xf32> to vector<8x1xf32>
    %23 = vector.broadcast %22 : vector<8x1xf32> to vector<8x16xf32>
    %24 = arith.divf %20, %23 : vector<8x16xf32>
    %cst_14 = arith.constant 0.000000e+00 : f32
    %25 = vector.broadcast %cst_14 : f32 to vector<8x16xf32>
    %26 = arith.select %10, %25, %24 : vector<8x16xi1>, vector<8x16xf32>
    %cst_15 = arith.constant dense<0.000000e+00> : vector<8x8xf32>
    %27 = tpu.matmul %26, %13, %cst_15 {dimension_numbers = #tpu.dot_dimension_numbers<[1], [0], [0], [1], [0, 0, 1, 1], [], []>} : vector<8x16xf32>, vector<16x8xf32>, vector<8x8xf32> -> vector<8x8xf32>
    %28 = vector.extract_strided_slice %6 {offsets = [0, 8], sizes = [8, 8], strides = [1, 1]} : vector<16x32xf32> to vector<8x8xf32>
    %29 = vector.extract_strided_slice %8 {offsets = [0, 8], sizes = [16, 8], strides = [1, 1]} : vector<32x64xf32> to vector<16x8xf32>
    %30 = vector.extract_strided_slice %8 {offsets = [0, 40], sizes = [16, 8], strides = [1, 1]} : vector<32x64xf32> to vector<16x8xf32>
    %cst_16 = arith.constant dense<0.000000e+00> : vector<8x16xf32>
    %31 = tpu.matmul %28, %29, %cst_16 {dimension_numbers = #tpu.dot_dimension_numbers<[1], [1], [0], [0], [0, 0, 1, 0], [], []>} : vector<8x8xf32>, vector<16x8xf32>, vector<8x16xf32> -> vector<8x16xf32>
    %32 = arith.addf %31, %9 : vector<8x16xf32>
    %cst_17 = arith.constant dense<0xFF800000> : vector<8xf32>
    %33 = vector.multi_reduction <maximumf>, %32, %cst_17 [1] : vector<8x16xf32> to vector<8xf32>
    %34 = vector.shape_cast %33 : vector<8xf32> to vector<8x1xf32>
    %35 = vector.broadcast %34 : vector<8x1xf32> to vector<8x16xf32>
    %36 = arith.subf %32, %35 : vector<8x16xf32>
    %37 = math.exp %36 : vector<8x16xf32>
    %cst_18 = arith.constant dense<0.000000e+00> : vector<8xf32>
    %38 = vector.multi_reduction <add>, %37, %cst_18 [1] : vector<8x16xf32> to vector<8xf32>
    %39 = vector.shape_cast %38 : vector<8xf32> to vector<8x1xf32>
    %40 = vector.broadcast %39 : vector<8x1xf32> to vector<8x16xf32>
    %41 = arith.divf %37, %40 : vector<8x16xf32>
    %cst_19 = arith.constant 0.000000e+00 : f32
    %42 = vector.broadcast %cst_19 : f32 to vector<8x16xf32>
    %43 = arith.select %10, %42, %41 : vector<8x16xi1>, vector<8x16xf32>
    %cst_20 = arith.constant dense<0.000000e+00> : vector<8x8xf32>
    %44 = tpu.matmul %43, %30, %cst_20 {dimension_numbers = #tpu.dot_dimension_numbers<[1], [0], [0], [1], [0, 0, 1, 1], [], []>} : vector<8x16xf32>, vector<16x8xf32>, vector<8x8xf32> -> vector<8x8xf32>
    %45 = vector.extract_strided_slice %6 {offsets = [0, 16], sizes = [8, 8], strides = [1, 1]} : vector<16x32xf32> to vector<8x8xf32>
    %46 = vector.extract_strided_slice %8 {offsets = [0, 16], sizes = [16, 8], strides = [1, 1]} : vector<32x64xf32> to vector<16x8xf32>
    %47 = vector.extract_strided_slice %8 {offsets = [0, 48], sizes = [16, 8], strides = [1, 1]} : vector<32x64xf32> to vector<16x8xf32>
    %cst_21 = arith.constant dense<0.000000e+00> : vector<8x16xf32>
    %48 = tpu.matmul %45, %46, %cst_21 {dimension_numbers = #tpu.dot_dimension_numbers<[1], [1], [0], [0], [0, 0, 1, 0], [], []>} : vector<8x8xf32>, vector<16x8xf32>, vector<8x16xf32> -> vector<8x16xf32>
    %49 = arith.addf %48, %9 : vector<8x16xf32>
    %cst_22 = arith.constant dense<0xFF800000> : vector<8xf32>
    %50 = vector.multi_reduction <maximumf>, %49, %cst_22 [1] : vector<8x16xf32> to vector<8xf32>
    %51 = vector.shape_cast %50 : vector<8xf32> to vector<8x1xf32>
    %52 = vector.broadcast %51 : vector<8x1xf32> to vector<8x16xf32>
    %53 = arith.subf %49, %52 : vector<8x16xf32>
    %54 = math.exp %53 : vector<8x16xf32>
    %cst_23 = arith.constant dense<0.000000e+00> : vector<8xf32>
    %55 = vector.multi_reduction <add>, %54, %cst_23 [1] : vector<8x16xf32> to vector<8xf32>
    %56 = vector.shape_cast %55 : vector<8xf32> to vector<8x1xf32>
    %57 = vector.broadcast %56 : vector<8x1xf32> to vector<8x16xf32>
    %58 = arith.divf %54, %57 : vector<8x16xf32>
    %cst_24 = arith.constant 0.000000e+00 : f32
    %59 = vector.broadcast %cst_24 : f32 to vector<8x16xf32>
    %60 = arith.select %10, %59, %58 : vector<8x16xi1>, vector<8x16xf32>
    %cst_25 = arith.constant dense<0.000000e+00> : vector<8x8xf32>
    %61 = tpu.matmul %60, %47, %cst_25 {dimension_numbers = #tpu.dot_dimension_numbers<[1], [0], [0], [1], [0, 0, 1, 1], [], []>} : vector<8x16xf32>, vector<16x8xf32>, vector<8x8xf32> -> vector<8x8xf32>
    %62 = vector.extract_strided_slice %6 {offsets = [0, 24], sizes = [8, 8], strides = [1, 1]} : vector<16x32xf32> to vector<8x8xf32>
    %63 = vector.extract_strided_slice %8 {offsets = [0, 24], sizes = [16, 8], strides = [1, 1]} : vector<32x64xf32> to vector<16x8xf32>
    %64 = vector.extract_strided_slice %8 {offsets = [0, 56], sizes = [16, 8], strides = [1, 1]} : vector<32x64xf32> to vector<16x8xf32>
    %cst_26 = arith.constant dense<0.000000e+00> : vector<8x16xf32>
    %65 = tpu.matmul %62, %63, %cst_26 {dimension_numbers = #tpu.dot_dimension_numbers<[1], [1], [0], [0], [0, 0, 1, 0], [], []>} : vector<8x8xf32>, vector<16x8xf32>, vector<8x16xf32> -> vector<8x16xf32>
    %66 = arith.addf %65, %9 : vector<8x16xf32>
    %cst_27 = arith.constant dense<0xFF800000> : vector<8xf32>
    %67 = vector.multi_reduction <maximumf>, %66, %cst_27 [1] : vector<8x16xf32> to vector<8xf32>
    %68 = vector.shape_cast %67 : vector<8xf32> to vector<8x1xf32>
    %69 = vector.broadcast %68 : vector<8x1xf32> to vector<8x16xf32>
    %70 = arith.subf %66, %69 : vector<8x16xf32>
    %71 = math.exp %70 : vector<8x16xf32>
    %cst_28 = arith.constant dense<0.000000e+00> : vector<8xf32>
    %72 = vector.multi_reduction <add>, %71, %cst_28 [1] : vector<8x16xf32> to vector<8xf32>
    %73 = vector.shape_cast %72 : vector<8xf32> to vector<8x1xf32>
    %74 = vector.broadcast %73 : vector<8x1xf32> to vector<8x16xf32>
    %75 = arith.divf %71, %74 : vector<8x16xf32>
    %cst_29 = arith.constant 0.000000e+00 : f32
    %76 = vector.broadcast %cst_29 : f32 to vector<8x16xf32>
    %77 = arith.select %10, %76, %75 : vector<8x16xi1>, vector<8x16xf32>
    %cst_30 = arith.constant dense<0.000000e+00> : vector<8x8xf32>
    %78 = tpu.matmul %77, %64, %cst_30 {dimension_numbers = #tpu.dot_dimension_numbers<[1], [0], [0], [1], [0, 0, 1, 1], [], []>} : vector<8x16xf32>, vector<16x8xf32>, vector<8x8xf32> -> vector<8x8xf32>
    %79 = tpu.concatenate %27, %44, %61, %78 in 1 : vector<8x8xf32>, vector<8x8xf32>, vector<8x8xf32>, vector<8x8xf32> -> vector<8x32xf32>
    %80 = vector.extract_strided_slice %2 {offsets = [8, 0], sizes = [8, 16], strides = [1, 1]} : vector<16x16xf32> to vector<8x16xf32>
    %81 = vector.extract_strided_slice %4 {offsets = [8, 0], sizes = [8, 16], strides = [1, 1]} : vector<16x16xi1> to vector<8x16xi1>
    %82 = vector.extract_strided_slice %6 {offsets = [8, 0], sizes = [8, 8], strides = [1, 1]} : vector<16x32xf32> to vector<8x8xf32>
    %83 = vector.extract_strided_slice %8 {offsets = [16, 0], sizes = [16, 8], strides = [1, 1]} : vector<32x64xf32> to vector<16x8xf32>
    %84 = vector.extract_strided_slice %8 {offsets = [16, 32], sizes = [16, 8], strides = [1, 1]} : vector<32x64xf32> to vector<16x8xf32>
    %cst_31 = arith.constant dense<0.000000e+00> : vector<8x16xf32>
    %85 = tpu.matmul %82, %83, %cst_31 {dimension_numbers = #tpu.dot_dimension_numbers<[1], [1], [0], [0], [0, 0, 1, 0], [], []>} : vector<8x8xf32>, vector<16x8xf32>, vector<8x16xf32> -> vector<8x16xf32>
    %86 = arith.addf %85, %80 : vector<8x16xf32>
    %cst_32 = arith.constant dense<0xFF800000> : vector<8xf32>
    %87 = vector.multi_reduction <maximumf>, %86, %cst_32 [1] : vector<8x16xf32> to vector<8xf32>
    %88 = vector.shape_cast %87 : vector<8xf32> to vector<8x1xf32>
    %89 = vector.broadcast %88 : vector<8x1xf32> to vector<8x16xf32>
    %90 = arith.subf %86, %89 : vector<8x16xf32>
    %91 = math.exp %90 : vector<8x16xf32>
    %cst_33 = arith.constant dense<0.000000e+00> : vector<8xf32>
    %92 = vector.multi_reduction <add>, %91, %cst_33 [1] : vector<8x16xf32> to vector<8xf32>
    %93 = vector.shape_cast %92 : vector<8xf32> to vector<8x1xf32>
    %94 = vector.broadcast %93 : vector<8x1xf32> to vector<8x16xf32>
    %95 = arith.divf %91, %94 : vector<8x16xf32>
    %cst_34 = arith.constant 0.000000e+00 : f32
    %96 = vector.broadcast %cst_34 : f32 to vector<8x16xf32>
    %97 = arith.select %81, %96, %95 : vector<8x16xi1>, vector<8x16xf32>
    %cst_35 = arith.constant dense<0.000000e+00> : vector<8x8xf32>
    %98 = tpu.matmul %97, %84, %cst_35 {dimension_numbers = #tpu.dot_dimension_numbers<[1], [0], [0], [1], [0, 0, 1, 1], [], []>} : vector<8x16xf32>, vector<16x8xf32>, vector<8x8xf32> -> vector<8x8xf32>
    %99 = vector.extract_strided_slice %6 {offsets = [8, 8], sizes = [8, 8], strides = [1, 1]} : vector<16x32xf32> to vector<8x8xf32>
    %100 = vector.extract_strided_slice %8 {offsets = [16, 8], sizes = [16, 8], strides = [1, 1]} : vector<32x64xf32> to vector<16x8xf32>
    %101 = vector.extract_strided_slice %8 {offsets = [16, 40], sizes = [16, 8], strides = [1, 1]} : vector<32x64xf32> to vector<16x8xf32>
    %cst_36 = arith.constant dense<0.000000e+00> : vector<8x16xf32>
    %102 = tpu.matmul %99, %100, %cst_36 {dimension_numbers = #tpu.dot_dimension_numbers<[1], [1], [0], [0], [0, 0, 1, 0], [], []>} : vector<8x8xf32>, vector<16x8xf32>, vector<8x16xf32> -> vector<8x16xf32>
    %103 = arith.addf %102, %80 : vector<8x16xf32>
    %cst_37 = arith.constant dense<0xFF800000> : vector<8xf32>
    %104 = vector.multi_reduction <maximumf>, %103, %cst_37 [1] : vector<8x16xf32> to vector<8xf32>
    %105 = vector.shape_cast %104 : vector<8xf32> to vector<8x1xf32>
    %106 = vector.broadcast %105 : vector<8x1xf32> to vector<8x16xf32>
    %107 = arith.subf %103, %106 : vector<8x16xf32>
    %108 = math.exp %107 : vector<8x16xf32>
    %cst_38 = arith.constant dense<0.000000e+00> : vector<8xf32>
    %109 = vector.multi_reduction <add>, %108, %cst_38 [1] : vector<8x16xf32> to vector<8xf32>
    %110 = vector.shape_cast %109 : vector<8xf32> to vector<8x1xf32>
    %111 = vector.broadcast %110 : vector<8x1xf32> to vector<8x16xf32>
    %112 = arith.divf %108, %111 : vector<8x16xf32>
    %cst_39 = arith.constant 0.000000e+00 : f32
    %113 = vector.broadcast %cst_39 : f32 to vector<8x16xf32>
    %114 = arith.select %81, %113, %112 : vector<8x16xi1>, vector<8x16xf32>
    %cst_40 = arith.constant dense<0.000000e+00> : vector<8x8xf32>
    %115 = tpu.matmul %114, %101, %cst_40 {dimension_numbers = #tpu.dot_dimension_numbers<[1], [0], [0], [1], [0, 0, 1, 1], [], []>} : vector<8x16xf32>, vector<16x8xf32>, vector<8x8xf32> -> vector<8x8xf32>
    %116 = vector.extract_strided_slice %6 {offsets = [8, 16], sizes = [8, 8], strides = [1, 1]} : vector<16x32xf32> to vector<8x8xf32>
    %117 = vector.extract_strided_slice %8 {offsets = [16, 16], sizes = [16, 8], strides = [1, 1]} : vector<32x64xf32> to vector<16x8xf32>
    %118 = vector.extract_strided_slice %8 {offsets = [16, 48], sizes = [16, 8], strides = [1, 1]} : vector<32x64xf32> to vector<16x8xf32>
    %cst_41 = arith.constant dense<0.000000e+00> : vector<8x16xf32>
    %119 = tpu.matmul %116, %117, %cst_41 {dimension_numbers = #tpu.dot_dimension_numbers<[1], [1], [0], [0], [0, 0, 1, 0], [], []>} : vector<8x8xf32>, vector<16x8xf32>, vector<8x16xf32> -> vector<8x16xf32>
    %120 = arith.addf %119, %80 : vector<8x16xf32>
    %cst_42 = arith.constant dense<0xFF800000> : vector<8xf32>
    %121 = vector.multi_reduction <maximumf>, %120, %cst_42 [1] : vector<8x16xf32> to vector<8xf32>
    %122 = vector.shape_cast %121 : vector<8xf32> to vector<8x1xf32>
    %123 = vector.broadcast %122 : vector<8x1xf32> to vector<8x16xf32>
    %124 = arith.subf %120, %123 : vector<8x16xf32>
    %125 = math.exp %124 : vector<8x16xf32>
    %cst_43 = arith.constant dense<0.000000e+00> : vector<8xf32>
    %126 = vector.multi_reduction <add>, %125, %cst_43 [1] : vector<8x16xf32> to vector<8xf32>
    %127 = vector.shape_cast %126 : vector<8xf32> to vector<8x1xf32>
    %128 = vector.broadcast %127 : vector<8x1xf32> to vector<8x16xf32>
    %129 = arith.divf %125, %128 : vector<8x16xf32>
    %cst_44 = arith.constant 0.000000e+00 : f32
    %130 = vector.broadcast %cst_44 : f32 to vector<8x16xf32>
    %131 = arith.select %81, %130, %129 : vector<8x16xi1>, vector<8x16xf32>
    %cst_45 = arith.constant dense<0.000000e+00> : vector<8x8xf32>
    %132 = tpu.matmul %131, %118, %cst_45 {dimension_numbers = #tpu.dot_dimension_numbers<[1], [0], [0], [1], [0, 0, 1, 1], [], []>} : vector<8x16xf32>, vector<16x8xf32>, vector<8x8xf32> -> vector<8x8xf32>
    %133 = vector.extract_strided_slice %6 {offsets = [8, 24], sizes = [8, 8], strides = [1, 1]} : vector<16x32xf32> to vector<8x8xf32>
    %134 = vector.extract_strided_slice %8 {offsets = [16, 24], sizes = [16, 8], strides = [1, 1]} : vector<32x64xf32> to vector<16x8xf32>
    %135 = vector.extract_strided_slice %8 {offsets = [16, 56], sizes = [16, 8], strides = [1, 1]} : vector<32x64xf32> to vector<16x8xf32>
    %cst_46 = arith.constant dense<0.000000e+00> : vector<8x16xf32>
    %136 = tpu.matmul %133, %134, %cst_46 {dimension_numbers = #tpu.dot_dimension_numbers<[1], [1], [0], [0], [0, 0, 1, 0], [], []>} : vector<8x8xf32>, vector<16x8xf32>, vector<8x16xf32> -> vector<8x16xf32>
    %137 = arith.addf %136, %80 : vector<8x16xf32>
    %cst_47 = arith.constant dense<0xFF800000> : vector<8xf32>
    %138 = vector.multi_reduction <maximumf>, %137, %cst_47 [1] : vector<8x16xf32> to vector<8xf32>
    %139 = vector.shape_cast %138 : vector<8xf32> to vector<8x1xf32>
    %140 = vector.broadcast %139 : vector<8x1xf32> to vector<8x16xf32>
    %141 = arith.subf %137, %140 : vector<8x16xf32>
    %142 = math.exp %141 : vector<8x16xf32>
    %cst_48 = arith.constant dense<0.000000e+00> : vector<8xf32>
    %143 = vector.multi_reduction <add>, %142, %cst_48 [1] : vector<8x16xf32> to vector<8xf32>
    %144 = vector.shape_cast %143 : vector<8xf32> to vector<8x1xf32>
    %145 = vector.broadcast %144 : vector<8x1xf32> to vector<8x16xf32>
    %146 = arith.divf %142, %145 : vector<8x16xf32>
    %cst_49 = arith.constant 0.000000e+00 : f32
    %147 = vector.broadcast %cst_49 : f32 to vector<8x16xf32>
    %148 = arith.select %81, %147, %146 : vector<8x16xi1>, vector<8x16xf32>
    %cst_50 = arith.constant dense<0.000000e+00> : vector<8x8xf32>
    %149 = tpu.matmul %148, %135, %cst_50 {dimension_numbers = #tpu.dot_dimension_numbers<[1], [0], [0], [1], [0, 0, 1, 1], [], []>} : vector<8x16xf32>, vector<16x8xf32>, vector<8x8xf32> -> vector<8x8xf32>
    %150 = tpu.concatenate %98, %115, %132, %149 in 1 : vector<8x8xf32>, vector<8x8xf32>, vector<8x8xf32>, vector<8x8xf32> -> vector<8x32xf32>
    %151 = tpu.concatenate %79, %150 in 0 : vector<8x32xf32>, vector<8x32xf32> -> vector<16x32xf32>
    %c0_51 = arith.constant 0 : index
    %c0_52 = arith.constant 0 : index
    %152 = vector.load %arg6[%c0_51, %c0_52] : memref<32x32xf32, #tpu.memory_space<vmem>>, vector<32x32xf32>
    %cst_53 = arith.constant dense<0.000000e+00> : vector<16x32xf32>
    %153 = tpu.matmul %151, %152, %cst_53 {dimension_numbers = #tpu.dot_dimension_numbers<[1], [0], [0], [1], [0, 0, 1, 1], [], []>} : vector<16x32xf32>, vector<32x32xf32>, vector<16x32xf32> -> vector<16x32xf32>
    %c0_54 = arith.constant 0 : index
    %c0_55 = arith.constant 0 : index
    %154 = vector.load %arg7[%c0_54, %c0_55] : memref<16x32xf32, #tpu.memory_space<vmem>>, vector<16x32xf32>
    tpu.vector_store %arg7[%c0_54, %c0_55], %153 {strides = array<i32>} : memref<16x32xf32, #tpu.memory_space<vmem>>, vector<16x32xf32>,
    return
  }
  func.func @transform_0(%arg0: i32) -> (i32, i32) {
    %c0_i32 = arith.constant 0 : i32
    %c0_i32_0 = arith.constant 0 : i32
    return %arg0, %c0_i32 : i32, i32
  }
  func.func @transform_1(%arg0: i32) -> (i32, i32) {
    %c0_i32 = arith.constant 0 : i32
    %c0_i32_0 = arith.constant 0 : i32
    return %arg0, %c0_i32 : i32, i32
  }
  func.func @transform_2(%arg0: i32) -> (i32, i32) {
    %c0_i32 = arith.constant 0 : i32
    %c0_i32_0 = arith.constant 0 : i32
    return %arg0, %c0_i32 : i32, i32
  }
  func.func @transform_3(%arg0: i32) -> (i32, i32) {
    %c0_i32 = arith.constant 0 : i32
    %c0_i32_0 = arith.constant 0 : i32
    %c0_i32_1 = arith.constant 0 : i32
    return %c0_i32, %c0_i32_0 : i32, i32
  }
  func.func @transform_4(%arg0: i32) -> (i32, i32) {
    %c0_i32 = arith.constant 0 : i32
    %c0_i32_0 = arith.constant 0 : i32
    %c0_i32_1 = arith.constant 0 : i32
    return %c0_i32, %c0_i32_0 : i32, i32
  }
  func.func @transform_5(%arg0: i32) -> (i32, i32) {
    %c0_i32 = arith.constant 0 : i32
    %c0_i32_0 = arith.constant 0 : i32
    %c0_i32_1 = arith.constant 0 : i32
    return %c0_i32, %c0_i32_0 : i32, i32
  }
  func.func @transform_6(%arg0: i32) -> (i32, i32) {
    %c0_i32 = arith.constant 0 : i32
    %c0_i32_0 = arith.constant 0 : i32
    return %arg0, %c0_i32 : i32, i32
  }
}

</mosaic_0001>

<bundles_post_ra>
// kernel: tpu_custom_call.1
= control target key start
LH: loop header
LB: loop body
LE: loop exit
PB: predicated region body
PF: predicated region fallthrough
CT: control target
= control target key end

     0   :  { %11 = vsyncpa [#allocation3], 0  ;;  %s2854_s0 = inlined_call_operand.hbm [shape: f32[16,32], index: 0, kind: input, shape index: {}]   ;;  %s2855_s1 = inlined_call_operand.hbm [shape: f32[32,32], index: 1, kind: input, shape index: {}]   ;;  %s2856_s2 = inlined_call_operand.hbm [shape: f32[16,16], index: 2, kind: input, shape index: {}]   ;;  %s2857_s3 = inlined_call_operand.hbm [shape: f32[32,32], index: 3, kind: input, shape index: {}]   ;;  %s2858_s4 = inlined_call_operand.hbm [shape: f32[32,64], index: 4, kind: input, shape index: {}]   ;;  %s2859_s5 = inlined_call_operand.hbm [shape: f32[32,32], index: 5, kind: input, shape index: {}]   ;;  %s2860_s6 = inlined_call_operand.hbm [shape: f32[16,32], index: 6, kind: output, shape index: {}]  }
   0x1   :  { %12 = vsyncpa [#allocation6], 0 }
   0x2   :  { %13 = vsyncpa [#allocation9], 0 }
   0x3   :  { %14 = vsyncpa [#allocation12], 0 }
   0x4   :  { %15 = vsyncpa [#allocation4], 0  ;;  %s2444_s21 = smov [#allocation5]   ;;  %s2445_s23 = smov [#allocation8]  }
   0x5   :  { %s33_s22 = sshll.u32 %s2444_s21, 4  ;;  %s57_s24 = sshll.u32 %s2445_s23, 4  ;;  %s34_s22 = int_to_ptr.vmem [resolvable:$true] %s33_s22  ;;  %s2500_s24 = int_to_ptr.vmem [resolvable:$true] %s57_s24 }
   0x6   :  { %s2280_s27 = scalar_lea.hbm %s2855_s1, 512 }
   0x7   :  { %p2281_p0 = scmp.ne.s32.totalorder %s2855_s1, %s2280_s27  ;;  %p2284_p1 = scmp.lt.u32.totalorder %s2280_s27, %s2855_s1 }
   0x9   :  { %p2286_p2 = pnand %p2284_p1, %p2281_p0 }
   0xb   :  { %2289 = shalt.err (!%p2286_p2)
}
   0xc   :  { %s2290_s8 = scalar_lea.vmem %s34_s22, 512  ;;  %p2295_p4 = scmp.lt.s32.totalorder %s34_s22, %s34_s22 }
   0xd   :  { %p2291_p3 = scmp.ne.s32.totalorder %s34_s22, %s2290_s8  ;;  %p2296_p5 = scmp.lt.s32.totalorder %s2290_s8, %s2290_s8 }
   0xf   :  { %p2297_p6 = por %p2296_p5, %p2295_p4 }
  0x11   :  { %p2298_p7 = pnand %p2297_p6, %p2291_p3 }
  0x13   :  { %2301 = shalt.err (!%p2298_p7)
}
  0x14   :  { %s2446_s9 = smov 128   ;;  %s2447_s10 = smov 8  }
  0x15   :  { %39 = dma.hbm_to_vmem [thread:$0]  %s2855_s1, 512, %s34_s22, [#allocation6], %s2446_s9, %s2446_s9, %s2447_s10  }
  0x16   :  { %s2302_s15 = scalar_lea.hbm %s2857_s3, 512 }
  0x17   :  { %p2303_p8 = scmp.ne.s32.totalorder %s2857_s3, %s2302_s15  ;;  %p2306_p9 = scmp.lt.u32.totalorder %s2302_s15, %s2857_s3 }
  0x19   :  { %p2308_p10 = pnand %p2306_p9, %p2303_p8 }
  0x1b   :  { %2311 = shalt.err (!%p2308_p10)
}
  0x1c   :  { %s2312_s20 = scalar_lea.vmem %s2500_s24, 512  ;;  %p2317_p12 = scmp.lt.s32.totalorder %s2500_s24, %s2500_s24 }
  0x1d   :  { %p2313_p11 = scmp.ne.s32.totalorder %s2500_s24, %s2312_s20  ;;  %p2318_p13 = scmp.lt.s32.totalorder %s2312_s20, %s2312_s20 }
  0x1f   :  { %p2319_p0 = por %p2318_p13, %p2317_p12 }
  0x21   :  { %p2320_p1 = pnand %p2319_p0, %p2313_p11 }
  0x23   :  { %2323 = shalt.err (!%p2320_p1)
}
  0x24   :  { %63 = dma.hbm_to_vmem [thread:$0]  %s2857_s3, 512, %s2500_s24, [#allocation9], %s2446_s9, %s2446_s9, %s2447_s10  }
  0x25   :  { %s2448_s22 = smov [#allocation2]   ;;  %s2449_s25 = smov [#allocation7]  }
  0x26   :  { %s21_s23 = sshll.u32 %s2448_s22, 4  ;;  %s45_s26 = sshll.u32 %s2449_s25, 4  ;;  %s22_s23 = int_to_ptr.vmem [resolvable:$true] %s21_s23  ;;  %s2537_s26 = int_to_ptr.vmem [resolvable:$true] %s45_s26 }
  0x27   :  { %s2324_s29 = scalar_lea.hbm %s2854_s0, 256 }
  0x28   :  { %p2325_p2 = scmp.ne.s32.totalorder %s2854_s0, %s2324_s29  ;;  %p2328_p3 = scmp.lt.u32.totalorder %s2324_s29, %s2854_s0 }
  0x2a   :  { %p2330_p4 = pnand %p2328_p3, %p2325_p2 }
  0x2c   :  { %2333 = shalt.err (!%p2330_p4)
}
  0x2d   :  { %s2334_s3 = scalar_lea.vmem %s22_s23, 256  ;;  %p2339_p6 = scmp.lt.s32.totalorder %s22_s23, %s22_s23 }
  0x2e   :  { %p2335_p5 = scmp.ne.s32.totalorder %s22_s23, %s2334_s3  ;;  %p2340_p7 = scmp.lt.s32.totalorder %s2334_s3, %s2334_s3 }
  0x30   :  { %p2341_p8 = por %p2340_p7, %p2339_p6 }
  0x32   :  { %p2342_p9 = pnand %p2341_p8, %p2335_p5 }
  0x34   :  { %2345 = shalt.err (!%p2342_p9)
}
  0x35   :  { %27 = dma.hbm_to_vmem [thread:$0]  %s2854_s0, 256, %s22_s23, [#allocation3], %s2446_s9, %s2446_s9, %s2447_s10  }
  0x36   :  { %s2346_s15 = scalar_lea.hbm %s2856_s2, 256 }
  0x37   :  { %p2347_p10 = scmp.ne.s32.totalorder %s2856_s2, %s2346_s15  ;;  %p2350_p11 = scmp.lt.u32.totalorder %s2346_s15, %s2856_s2 }
  0x39   :  { %p2352_p12 = pnand %p2350_p11, %p2347_p10 }
  0x3b   :  { %2355 = shalt.err (!%p2352_p12)
}
  0x3c   :  { %s2356_s20 = scalar_lea.vmem %s2537_s26, 256  ;;  %p2361_p0 = scmp.lt.s32.totalorder %s2537_s26, %s2537_s26 }
  0x3d   :  { %p2357_p13 = scmp.ne.s32.totalorder %s2537_s26, %s2356_s20  ;;  %p2362_p1 = scmp.lt.s32.totalorder %s2356_s20, %s2356_s20 }
  0x3f   :  { %p2363_p2 = por %p2362_p1, %p2361_p0 }
  0x41   :  { %p2364_p3 = pnand %p2363_p2, %p2357_p13 }
  0x43   :  { %2367 = shalt.err (!%p2364_p3)
}
  0x44   :  { %51 = dma.hbm_to_vmem [thread:$0]  %s2856_s2, 256, %s2537_s26, [#allocation6], %s2446_s9, %s2446_s9, %s2447_s10  }
  0x45   :  { %s2450_s21 = smov [#allocation10]   ;;  %s2451_s23 = smov [#allocation11]  }
  0x46   :  { %s69_s22 = sshll.u32 %s2450_s21, 4  ;;  %s81_s25 = sshll.u32 %s2451_s23, 4  ;;  %s70_s22 = int_to_ptr.vmem [resolvable:$true] %s69_s22  ;;  %s2574_s25 = int_to_ptr.vmem [resolvable:$true] %s81_s25 }
  0x47   :  { %s2368_s29 = scalar_lea.hbm %s2858_s4, 512 }
  0x48   :  { %p2369_p4 = scmp.ne.s32.totalorder %s2858_s4, %s2368_s29  ;;  %p2372_p5 = scmp.lt.u32.totalorder %s2368_s29, %s2858_s4 }
  0x4a   :  { %p2374_p6 = pnand %p2372_p5, %p2369_p4 }
  0x4c   :  { %2377 = shalt.err (!%p2374_p6)
}
  0x4d   :  { %s2378_s2 = scalar_lea.vmem %s70_s22, 512  ;;  %p2383_p8 = scmp.lt.s32.totalorder %s70_s22, %s70_s22 }
  0x4e   :  { %p2379_p7 = scmp.ne.s32.totalorder %s70_s22, %s2378_s2  ;;  %p2384_p9 = scmp.lt.s32.totalorder %s2378_s2, %s2378_s2 }
  0x50   :  { %p2385_p10 = por %p2384_p9, %p2383_p8 }
  0x52   :  { %p2386_p11 = pnand %p2385_p10, %p2379_p7 }
  0x54   :  { %2389 = shalt.err (!%p2386_p11)
}
  0x55   :  { %75 = dma.hbm_to_vmem [thread:$0]  %s2858_s4, 512, %s70_s22, [#allocation9], %s2446_s9, %s2446_s9, %s2447_s10  }
  0x56   :  { %s2390_s13 = scalar_lea.hbm %s2859_s5, 512 }
  0x57   :  { %p2391_p12 = scmp.ne.s32.totalorder %s2859_s5, %s2390_s13  ;;  %p2394_p13 = scmp.lt.u32.totalorder %s2390_s13, %s2859_s5 }
  0x59   :  { %p2396_p0 = pnand %p2394_p13, %p2391_p12 }
  0x5b   :  { %2399 = shalt.err (!%p2396_p0)
}
  0x5c   :  { %s2400_s18 = scalar_lea.vmem %s2574_s25, 512  ;;  %p2405_p2 = scmp.lt.s32.totalorder %s2574_s25, %s2574_s25 }
  0x5d   :  { %p2401_p1 = scmp.ne.s32.totalorder %s2574_s25, %s2400_s18  ;;  %p2406_p3 = scmp.lt.s32.totalorder %s2400_s18, %s2400_s18 }
  0x5f   :  { %p2407_p4 = por %p2406_p3, %p2405_p2 }
  0x61   :  { %p2408_p5 = pnand %p2407_p4, %p2401_p1 }
  0x63   :  { %2411 = shalt.err (!%p2408_p5)
}
  0x64   :  { %87 = dma.hbm_to_vmem [thread:$0]  %s2859_s5, 512, %s2574_s25, [#allocation12], %s2446_s9, %s2446_s9, %s2447_s10  }
  0x65   :  { %2434 = dma.done.wait [#allocation3], 256  }
  0x66   :  { %2435 = vsyncadd [#allocation3], 4294967040 }
  0x67   :  { %2436 = dma.done.wait [#allocation6], 768  }
  0x68   :  { %2437 = vsyncadd [#allocation6], 4294966528 }
  0x69   :  { %2438 = dma.done.wait [#allocation9], 1024  }
  0x6a   :  { %2439 = vsyncadd [#allocation9], 4294966272 }
  0x6b   :  { %2440 = dma.done.wait [#allocation12], 512  }
  0x6c   :  { %2441 = vsyncadd [#allocation12], 4294966784  ;;  %vm120_vm0 = vcmask 261120   ;;  %v202_v0 = vld [vmem:[#allocation10] sm:$0xff]  ;;  %v203_v1 = vld [vmem:[#allocation10 + $0x8] sm:$0xff]  ;;  %v2452_v16 = vmov 0.0|0.0  }
  0x6d   :  { %v204_v2 = vld [vmem:[#allocation10 + $0x10] sm:$0xff]  ;;  %v2085_v3 = vpack.c.bf16 %v203_v1, %v202_v0  ;;  %v205_v4 = vld [vmem:[#allocation10 + $0x18] sm:$0xff]  ;;  %v116_v7 = vld [vmem:[#allocation8] sm:$0xff]  ;;  %vm2453_vm1 = vmmov 0   ;;  %v2454_v17 = vmov 0.0   ;;  %vm303_vm2 = vcmask 64512  }
  0x6e   :  { %v108_v5 = vld [vmem:[#allocation5] sm:$0xff]  ;;  %v2089_v6 = vpack.c.bf16 %v205_v4, %v204_v2  ;;  %v117_v8 = vld [vmem:[#allocation8 + $0x8] sm:$0xff]  ;;  %v119_v11 = vld [vmem:[#allocation8 + $0x18] sm:$0xff]  ;;  %s2455_s5 = smov 120   ;;  %vm383_vm4 = vcmask 130048   ;;  %s2456_s20 = smov 96  }
  0x6f   :  { %1948 = vmatprep.mubr.msk.f32.mxu1 %vm120_vm0, %v108_v5  ;;  %v118_v9 = vld [vmem:[#allocation8 + $0x10] sm:$0xff]  ;;  %2086 = vmatprep.subr.bf16.mxu1 %v2085_v3  ;;  %v2077_v10 = vpack.c.bf16 %v117_v8, %v116_v7  ;;  %v106_v12 = vld [vmem:[#allocation2] sm:$0xff]  ;;  %v109_v14 = vld [vmem:[#allocation5 + $0x8] sm:$0xff]  ;;  %s2457_s0 = smov 88   ;;  %s2458_s1 = smov 112   ;;  %vm1008_vm7 = vcmask 195584  }
  0x70   :  { %2088 = vmatpush3.bf16.msra.mxu1 %v2085_v3  ;;  %v2081_v13 = vpack.c.bf16 %v119_v11, %v118_v9  ;;  %1937 = vmatprep.mubr.msk.f32.mxu0 %vm120_vm0, %v106_v12  ;;  %v107_v15 = vld [vmem:[#allocation2 + $0x8] sm:$0xff]  ;;  %vm2621_vm3 = vmpackc.low %vm303_vm2, %vm303_vm2  ;;  %v2648_v30 = vld [vmem:[#allocation7] sm:$0xff]  ;;  %s2459_s21 = smov 80   ;;  %s2460_s22 = smov 104  }
  0x71   :  { %2090 = vmatprep.subr.bf16.mxu1 %v2089_v6  ;;  %2078 = vmatprep.subr.bf16.mxu0 %v2077_v10  ;;  %v110_v44 = vld [vmem:[#allocation5 + $0x10] sm:$0xff]  ;;  %v111_v45 = vld [vmem:[#allocation5 + $0x18] sm:$0xff]  ;;  %vm114_vm5 = vcmp.lt.f32.partialorder %v2648_v30, 0.0  ;;  %s2461_s23 = smov 72   ;;  %s2462_s25 = smov 16  }
  0x72   :  { %2080 = vmatpush3.bf16.msra.mxu0 %v2077_v10  ;;  %s2463_s27 = smov 24   ;;  %s2464_s28 = smov [#allocation13]  }
  0x73   :  { %2082 = vmatprep.subr.bf16.mxu0 %v2081_v13  ;;  %s1806_s29 = sshll.u32 %s2464_s28, 4  ;;  %s1807_s29 = int_to_ptr.vmem [resolvable:$true] %s1806_s29 }
  0x74   :  { %2092 = vmatpush3.bf16.msra.mxu1 %v2089_v6  ;;  %s2412_s30 = scalar_lea.vmem %s1807_s29, 256  ;;  %p2417_p7 = scmp.lt.s32.totalorder %s1807_s29, %s1807_s29 }
  0x75   :  { %2097 = vmatprep.subr.bf16.mxu1 %v2452_v16  ;;  %p2413_p6 = scmp.ne.s32.totalorder %s1807_s29, %s2412_s30  ;;  %p2418_p8 = scmp.lt.s32.totalorder %s2412_s30, %s2412_s30 }
  0x76   :  { %2084 = vmatpush3.bf16.msra.mxu0 %v2081_v13 }
  0x77   :  { %1949 = vmatmul.mubr.msk.f32.vlgmr.msra.gmra.mrb[0].mxu1 %vm120_vm0, %v109_v14  ;;  %2093 = vmatprep.subr.bf16.mxu0 %v2452_v16  ;;  %p2419_p9 = por %p2418_p8, %p2417_p7 }
  0x78   :  { %1951 = vmatprep.mubr.msk.f32.mxu1 %vm120_vm0, %v110_v44 }
  0x79   :  { %1938 = vmatmul.mubr.msk.f32.vlgmr.msra.gmra.mrb[0].mxu0 %vm120_vm0, %v107_v15  ;;  %p2420_p10 = pnand %p2419_p9, %p2413_p6 }
  0x7a   :  { %1958 = vmatprep.mubr.msk.f32.mxu0 %vm2453_vm1, %v2454_v17 }
  0x7b   :  { %1952 = vmatmul.mubr.msk.f32.gmra.mrb[2].mxu1 %vm120_vm0, %v111_v45 }
  0x7c   :  { %1965 = vmatprep.mubr.msk.f32.mxu1 %vm2453_vm1, %v2454_v17 }
 0x14a   :  { %v1950_v18 = vpop.f32.mrb[0].mxu1 }
 0x14b   :  { %v284_v19 = vpop.f32.mrb[1].mxu1 }
 0x14c   :  { %v2625_v21 = vpack.i.bf16 %v1950_v18, %v284_v19  ;;  %v2094_v22 = vpack.c.bf16 %v1950_v18, %v284_v19  ;;  %v2627_v23 = vpop.f32.mrb[0].mxu0 }
 0x14d   :  { %v2629_v24 = vpop.f32.mrb[1].mxu0 }
 0x14e   :  { %2179 = vrot.lane.b32.xlu0 %v2625_v21, %s2455_s5  ;;  %2096 = vmatpush3.bf16.xpose.msk.msra.mxu0 %vm2621_vm3, %v2094_v22  ;;  %v2676_v63 = vpop.f32.mrb[2].mxu1 }
 0x14f   :  { %2100 = vmatprep.subr.bf16.mxu0 %v2452_v16  ;;  %v2678_v0 = vpop.f32.mrb[3].mxu1 }
 0x150   :  { %v2693_v10 = vpack.i.bf16 %v2676_v63, %v2678_v0  ;;  %v2122_v11 = vpack.c.bf16 %v2676_v63, %v2678_v0 }
 0x152   :  { %475 = vrot.lane.b32.xlu0 %v2629_v24, %s2455_s5 }
 0x155   :  { %1959 = vmatmul.mubr.msk.f32.vlgmr.msra.gmra.mrb[2].mxu0 %vm303_vm2, %v2629_v24 }
 0x156   :  { %1972 = vmatprep.mubr.msk.f32.mxu0 %vm2453_vm1, %v2454_v17 }
 0x1c0   :  { %v2180_v25 = vpop.permute.xlu0 %2179 }
 0x1c1   :  { %v2182_v26 = vunpack.i.h.bf16 %v2180_v25  ;;  %v2181_v27 = vunpack.i.l.bf16 %v2180_v25 }
 0x1c3   :  { %v2101_v28 = vpack.c.bf16 %v2182_v26, %v2181_v27 }
 0x1c4   :  { %v476_v29 = vpop.permute.xlu0 %475 }
 0x1c5   :  { %2103 = vmatpush3.bf16.xpose.msk.msra.mxu0 %vm2621_vm3, %v2101_v28 }
 0x1c6   :  { %2111 = vmatprep.subr.bf16.mxu0 %v2452_v16 }
 0x1cc   :  { %1973 = vmatmul.mubr.msk.f32.vlgmr.msra.gmra.mrb[4].mxu0 %vm303_vm2, %v476_v29 }
 0x1cd   :  { %1993 = vmatprep.mubr.msk.f32.mxu0 %vm2453_vm1, %v2454_v17 }
 0x228   :  { %v379_v31 = vpop.f32.mrb[2].mxu0 }
 0x229   :  { %v380_v32 = vadd.f32 %v379_v31, %v2648_v30  ;;  %v1960_v33 = vpop.f32.mrb[3].mxu0 }
 0x22b   :  { %v384_v34 = vsel %vm383_vm4, %v380_v32, -inf }
 0x22c   :  { %385 = vmax.xlane.f32.xlu1 %v384_v34 }
 0x29f   :  { %v553_v35 = vpop.f32.mrb[4].mxu0 }
 0x2a0   :  { %v554_v36 = vadd.f32 %v553_v35, %v2648_v30  ;;  %v1974_v37 = vpop.f32.mrb[5].mxu0 }
 0x2a2   :  { %v557_v38 = vsel %vm383_vm4, %v554_v36, -inf }
 0x2a3   :  { %558 = vmax.xlane.f32.xlu1 %v557_v38 }
 0x2b4   :  { %2184 = vrot.lane.b32.xlu1 %v2625_v21, %s2456_s20 }
 0x2b8   :  { %2189 = vrot.lane.b32.xlu1 %v2625_v21, %s2457_s0 }
 0x2b9   :  { %v386_v39 = vpop.xlane.xlu1 %385 }
 0x2ba   :  { %v387_v40 = vsub.f32 %v380_v32, %v386_v39 }
 0x2bc   :  { %v388_v41 = vmul.f32 1.442695, %v387_v40  ;;  %2194 = vrot.lane.b32.xlu1 %v2625_v21, %s2458_s1 }
 0x2be   :  { %2248 = vpow2.f32 %v388_v41 }
 0x2c8   :  { %v2249_v42 = vpop.eup %2248 }
 0x2c9   :  { %v390_v43 = vsel %vm383_vm4, %v2249_v42, 0.0 }
 0x2ca   :  { %391 = vadd.xlane.f32.xlu0 %v390_v43 }
 0x330   :  { %v559_v46 = vpop.xlane.xlu1 %558 }
 0x331   :  { %v560_v47 = vsub.f32 %v554_v36, %v559_v46 }
 0x333   :  { %v561_v48 = vmul.f32 1.442695, %v560_v47 }
 0x334   :  { %v2185_v49 = vpop.permute.xlu1 %2184 }
 0x335   :  { %2250 = vpow2.f32 %v561_v48  ;;  %v2187_v50 = vunpack.i.h.bf16 %v2185_v49  ;;  %v2186_v51 = vunpack.i.l.bf16 %v2185_v49 }
 0x337   :  { %v2098_v52 = vpack.c.bf16 %v2187_v50, %v2186_v51 }
 0x338   :  { %v2190_v56 = vpop.permute.xlu1 %2189 }
 0x339   :  { %2099 = vmatpush3.bf16.msra.mxu1 %v2098_v52  ;;  %v2192_v57 = vunpack.i.h.bf16 %v2190_v56  ;;  %v2191_v58 = vunpack.i.l.bf16 %v2190_v56 }
 0x33a   :  { %2104 = vmatprep.subr.bf16.mxu1 %v2452_v16 }
 0x33b   :  { %v2105_v61 = vpack.c.bf16 %v2192_v57, %v2191_v58 }
 0x33c   :  { %v2195_v1 = vpop.permute.xlu1 %2194 }
 0x33d   :  { %v2197_v3 = vunpack.i.h.bf16 %v2195_v1  ;;  %v2196_v4 = vunpack.i.l.bf16 %v2195_v1 }
 0x33f   :  { %v2251_v53 = vpop.eup %2250  ;;  %v2108_v7 = vpack.c.bf16 %v2197_v3, %v2196_v4 }
 0x340   :  { %v563_v54 = vsel %vm383_vm4, %v2251_v53, 0.0 }
 0x341   :  { %564 = vadd.xlane.f32.xlu1 %v563_v54 }
 0x352   :  { %648 = vrot.lane.b32.xlu1 %v2629_v24, %s2458_s1 }
 0x357   :  { %v392_v55 = vpop.xlane.xlu0 %391 }
 0x358   :  { %2252 = vrcp.f32 %v392_v55 }
 0x362   :  { %v2253_v59 = vpop.eup %2252 }
 0x363   :  { %v394_v60 = vmul.f32 %v2253_v59, %v2249_v42 }
 0x365   :  { %v395_v62 = vsel %vm114_vm5, 0.0, %v394_v60 }
 0x366   :  { %1966 = vmatmul.mubr.msk.f32.vlgmr.msra.gmra.mrb[4].mxu1 %vm383_vm4, %v395_v62 }
 0x367   :  { %2106 = vmatpush3.bf16.msra.mxu1 %v2105_v61  ;;  %1979 = vmatprep.mubr.msk.f32.mxu1 %vm2453_vm1, %v2454_v17 }
 0x368   :  { %2107 = vmatprep.subr.bf16.mxu1 %v2452_v16 }
 0x3ce   :  { %v565_v2 = vpop.xlane.xlu1 %564 }
 0x3cf   :  { %2254 = vrcp.f32 %v565_v2 }
 0x3d2   :  { %v649_v9 = vpop.permute.xlu1 %648 }
 0x3d9   :  { %v2255_v5 = vpop.eup %2254 }
 0x3da   :  { %v567_v6 = vmul.f32 %v2255_v5, %v2251_v53  ;;  %v2750_v5 = vld [vmem:[#allocation7 + $0x8] sm:$0xff] }
 0x3db   :  { %vm115_vm6 = vcmp.lt.f32.partialorder %v2750_v5, 0.0 }
 0x3dc   :  { %v568_v8 = vsel %vm114_vm5, 0.0, %v567_v6 }
 0x3dd   :  { %1980 = vmatmul.mubr.msk.f32.vlgmr.msra.gmra.mrb[6].mxu1 %vm383_vm4, %v568_v8 }
 0x3de   :  { %2110 = vmatpush3.bf16.xpose.msk.msra.mxu1 %vm2621_vm3, %v2108_v7  ;;  %1986 = vmatprep.mubr.msk.f32.mxu1 %vm2453_vm1, %v2454_v17 }
 0x3df   :  { %2118 = vmatprep.subr.bf16.mxu1 %v2452_v16 }
 0x3e5   :  { %1987 = vmatmul.mubr.msk.f32.vlgmr.msra.gmra.mrb[8].mxu1 %vm303_vm2, %v649_v9 }
 0x3e6   :  { %2007 = vmatprep.mubr.msk.f32.mxu1 %vm2453_vm1, %v2454_v17 }
 0x439   :  { %v2697_v12 = vpop.f32.mrb[4].mxu1 }
 0x43a   :  { %v1967_v13 = vpop.f32.mrb[5].mxu1 }
 0x4b0   :  { %v2699_v14 = vpop.f32.mrb[6].mxu1 }
 0x4b1   :  { %v1981_v15 = vpop.f32.mrb[7].mxu1 }
 0x4b8   :  { %v726_v18 = vpop.f32.mrb[8].mxu1 }
 0x4b9   :  { %v727_v19 = vadd.f32 %v726_v18, %v2648_v30  ;;  %v1988_v22 = vpop.f32.mrb[9].mxu1 }
 0x4bb   :  { %v730_v25 = vsel %vm383_vm4, %v727_v19, -inf }
 0x4bc   :  { %731 = vmax.xlane.f32.xlu0 %v730_v25 }
 0x4d2   :  { %2199 = vrot.lane.b32.xlu0 %v2625_v21, %s2459_s21 }
 0x4d6   :  { %2204 = vrot.lane.b32.xlu0 %v2625_v21, %s2460_s22 }
 0x4da   :  { %821 = vrot.lane.b32.xlu0 %v2629_v24, %s2460_s22 }
 0x549   :  { %v732_v26 = vpop.xlane.xlu0 %731 }
 0x54a   :  { %v733_v27 = vsub.f32 %v727_v19, %v732_v26 }
 0x54c   :  { %v734_v28 = vmul.f32 1.442695, %v733_v27 }
 0x54d   :  { %v2200_v29 = vpop.permute.xlu0 %2199 }
 0x54e   :  { %2256 = vpow2.f32 %v734_v28  ;;  %v2202_v31 = vunpack.i.h.bf16 %v2200_v29  ;;  %v2201_v32 = vunpack.i.l.bf16 %v2200_v29 }
 0x550   :  { %v2112_v33 = vpack.c.bf16 %v2202_v31, %v2201_v32 }
 0x551   :  { %v2205_v37 = vpop.permute.xlu0 %2204 }
 0x552   :  { %2113 = vmatpush3.bf16.msra.mxu0 %v2112_v33  ;;  %v2207_v38 = vunpack.i.h.bf16 %v2205_v37  ;;  %v2206_v24 = vunpack.i.l.bf16 %v2205_v37 }
 0x553   :  { %2114 = vmatprep.subr.bf16.mxu0 %v2452_v16 }
 0x554   :  { %v2115_v41 = vpack.c.bf16 %v2207_v38, %v2206_v24 }
 0x555   :  { %v822_v43 = vpop.permute.xlu0 %821 }
 0x558   :  { %v2257_v34 = vpop.eup %2256 }
 0x559   :  { %v736_v35 = vsel %vm383_vm4, %v2257_v34, 0.0 }
 0x55a   :  { %737 = vadd.xlane.f32.xlu1 %v736_v35 }
 0x5e7   :  { %v738_v36 = vpop.xlane.xlu1 %737 }
 0x5e8   :  { %2258 = vrcp.f32 %v738_v36 }
 0x5f2   :  { %v2259_v39 = vpop.eup %2258 }
 0x5f3   :  { %v740_v40 = vmul.f32 %v2259_v39, %v2257_v34 }
 0x5f5   :  { %v741_v42 = vsel %vm114_vm5, 0.0, %v740_v40 }
 0x5f6   :  { %1994 = vmatmul.mubr.msk.f32.vlgmr.msra.gmra.mrb[6].mxu0 %vm383_vm4, %v741_v42 }
 0x5f7   :  { %2117 = vmatpush3.bf16.xpose.msk.msra.mxu0 %vm2621_vm3, %v2115_v41  ;;  %2000 = vmatprep.mubr.msk.f32.mxu0 %vm2453_vm1, %v2454_v17 }
 0x5f8   :  { %2125 = vmatprep.subr.bf16.mxu0 %v2452_v16 }
 0x5fe   :  { %2001 = vmatmul.mubr.msk.f32.vlgmr.msra.gmra.mrb[8].mxu0 %vm303_vm2, %v822_v43 }
 0x5ff   :  { %2021 = vmatprep.mubr.msk.f32.mxu0 %vm2453_vm1, %v2454_v17 }
 0x6c9   :  { %v2722_v44 = vpop.f32.mrb[6].mxu0 }
 0x6ca   :  { %v1995_v45 = vpop.f32.mrb[7].mxu0 }
 0x6d1   :  { %v899_v46 = vpop.f32.mrb[8].mxu0 }
 0x6d2   :  { %v900_v47 = vadd.f32 %v899_v46, %v2648_v30  ;;  %v2002_v48 = vpop.f32.mrb[9].mxu0 }
 0x6d4   :  { %v903_v49 = vsel %vm383_vm4, %v900_v47, -inf }
 0x6d5   :  { %904 = vmax.xlane.f32.xlu0 %v903_v49 }
 0x6eb   :  { %2214 = vrot.lane.b32.xlu0 %v2693_v10, %s2456_s20 }
 0x762   :  { %v905_v50 = vpop.xlane.xlu0 %904 }
 0x763   :  { %v906_v51 = vsub.f32 %v900_v47, %v905_v50 }
 0x765   :  { %v907_v52 = vmul.f32 1.442695, %v906_v51 }
 0x766   :  { %v2215_v53 = vpop.permute.xlu0 %2214 }
 0x767   :  { %2260 = vpow2.f32 %v907_v52  ;;  %v2217_v54 = vunpack.i.h.bf16 %v2215_v53  ;;  %v2216_v55 = vunpack.i.l.bf16 %v2215_v53 }
 0x769   :  { %v2126_v56 = vpack.c.bf16 %v2217_v54, %v2216_v55 }
 0x76b   :  { %2127 = vmatpush3.bf16.msra.mxu0 %v2126_v56 }
 0x76c   :  { %2128 = vmatprep.subr.bf16.mxu0 %v2452_v16 }
 0x771   :  { %v2261_v57 = vpop.eup %2260 }
 0x772   :  { %v909_v58 = vsel %vm383_vm4, %v2261_v57, 0.0 }
 0x773   :  { %910 = vadd.xlane.f32.xlu1 %v909_v58 }
 0x784   :  { %2209 = vrot.lane.b32.xlu1 %v2625_v21, %s2461_s23 }
 0x800   :  { %v911_v59 = vpop.xlane.xlu1 %910 }
 0x801   :  { %2262 = vrcp.f32 %v911_v59 }
 0x804   :  { %v2210_v60 = vpop.permute.xlu1 %2209 }
 0x805   :  { %v2212_v61 = vunpack.i.h.bf16 %v2210_v60  ;;  %v2211_v62 = vunpack.i.l.bf16 %v2210_v60 }
 0x807   :  { %v2119_v1 = vpack.c.bf16 %v2212_v61, %v2211_v62 }
 0x809   :  { %2120 = vmatpush3.bf16.msra.mxu1 %v2119_v1 }
 0x80a   :  { %2121 = vmatprep.subr.bf16.mxu1 %v2452_v16 }
 0x80b   :  { %v2263_v2 = vpop.eup %2262 }
 0x80c   :  { %v913_v3 = vmul.f32 %v2263_v2, %v2261_v57 }
 0x80e   :  { %v914_v4 = vsel %vm114_vm5, 0.0, %v913_v3 }
 0x80f   :  { %2008 = vmatmul.mubr.msk.f32.vlgmr.msra.gmra.mrb[10].mxu1 %vm383_vm4, %v914_v4 }
 0x810   :  { %2014 = vmatprep.mubr.msk.f32.mxu1 %vm2453_vm1, %v2454_v17 }
 0x812   :  { %2124 = vmatpush3.bf16.xpose.msk.msra.mxu1 %vm2621_vm3, %v2122_v11 }
 0x813   :  { %2132 = vmatprep.subr.bf16.mxu1 %v2452_v16 }
 0x819   :  { %2015 = vmatmul.mubr.msk.f32.vlgmr.msra.gmra.mrb[12].mxu1 %vm303_vm2, %v2627_v23 }
 0x81a   :  { %2035 = vmatprep.mubr.msk.f32.mxu1 %vm2453_vm1, %v2454_v17 }
 0x8e2   :  { %v2748_v21 = vpop.f32.mrb[10].mxu1 }
 0x8e3   :  { %v2009_v30 = vpop.f32.mrb[11].mxu1 }
 0x8ec   :  { %v1085_v6 = vpop.f32.mrb[12].mxu1 }
 0x8ed   :  { %v1086_v7 = vadd.f32 %v1085_v6, %v2750_v5  ;;  %v2016_v63 = vpop.f32.mrb[13].mxu1 }
 0x8ef   :  { %v1089_v0 = vsel %vm383_vm4, %v1086_v7, -inf }
 0x8f0   :  { %1090 = vmax.xlane.f32.xlu1 %v1089_v0 }
 0x97d   :  { %v1091_v8 = vpop.xlane.xlu1 %1090 }
 0x97e   :  { %v1092_v9 = vsub.f32 %v1086_v7, %v1091_v8 }
 0x980   :  { %v1093_v11 = vmul.f32 1.442695, %v1092_v9 }
 0x982   :  { %2264 = vpow2.f32 %v1093_v11 }
 0x98c   :  { %v2265_v13 = vpop.eup %2264 }
 0x98d   :  { %v1095_v15 = vsel %vm383_vm4, %v2265_v13, 0.0 }
 0x98e   :  { %1096 = vadd.xlane.f32.xlu0 %v1095_v15 }
 0x9a4   :  { %2219 = vrot.lane.b32.xlu0 %v2693_v10, %s2455_s5 }
 0x9a8   :  { %1180 = vrot.lane.b32.xlu0 %v2627_v23, %s2455_s5 }
 0xa1b   :  { %v1097_v18 = vpop.xlane.xlu0 %1096 }
 0xa1c   :  { %2266 = vrcp.f32 %v1097_v18 }
 0xa1f   :  { %v2220_v19 = vpop.permute.xlu0 %2219 }
 0xa20   :  { %v2222_v22 = vunpack.i.h.bf16 %v2220_v19  ;;  %v2221_v25 = vunpack.i.l.bf16 %v2220_v19 }
 0xa22   :  { %v2129_v28 = vpack.c.bf16 %v2222_v22, %v2221_v25 }
 0xa23   :  { %v1181_v31 = vpop.permute.xlu0 %1180 }
 0xa26   :  { %v2267_v26 = vpop.eup %2266 }
 0xa27   :  { %v1099_v27 = vmul.f32 %v2267_v26, %v2265_v13 }
 0xa29   :  { %v1100_v29 = vsel %vm115_vm6, 0.0, %v1099_v27 }
 0xa2a   :  { %2022 = vmatmul.mubr.msk.f32.vlgmr.msra.gmra.mrb[10].mxu0 %vm383_vm4, %v1100_v29 }
 0xa2b   :  { %2131 = vmatpush3.bf16.xpose.msk.msra.mxu0 %vm2621_vm3, %v2129_v28  ;;  %2028 = vmatprep.mubr.msk.f32.mxu0 %vm2453_vm1, %v2454_v17 }
 0xa2c   :  { %2139 = vmatprep.subr.bf16.mxu0 %v2452_v16 }
 0xa32   :  { %2029 = vmatmul.mubr.msk.f32.vlgmr.msra.gmra.mrb[12].mxu0 %vm303_vm2, %v1181_v31 }
 0xa33   :  { %2049 = vmatprep.mubr.msk.f32.mxu0 %vm2453_vm1, %v2454_v17 }
 0xafd   :  { %v2771_v32 = vpop.f32.mrb[10].mxu0 }
 0xafe   :  { %v2023_v33 = vpop.f32.mrb[11].mxu0 }
 0xb05   :  { %v1258_v34 = vpop.f32.mrb[12].mxu0 }
 0xb06   :  { %v1259_v35 = vadd.f32 %v1258_v34, %v2750_v5  ;;  %v2030_v36 = vpop.f32.mrb[13].mxu0 }
 0xb08   :  { %v1262_v37 = vsel %vm383_vm4, %v1259_v35, -inf }
 0xb09   :  { %1263 = vmax.xlane.f32.xlu1 %v1262_v37 }
 0xb1a   :  { %2224 = vrot.lane.b32.xlu1 %v2693_v10, %s2457_s0 }
 0xb1e   :  { %2229 = vrot.lane.b32.xlu1 %v2693_v10, %s2458_s1 }
 0xb22   :  { %1353 = vrot.lane.b32.xlu1 %v2627_v23, %s2458_s1 }
 0xb96   :  { %v1264_v38 = vpop.xlane.xlu1 %1263 }
 0xb97   :  { %v1265_v24 = vsub.f32 %v1259_v35, %v1264_v38 }
 0xb99   :  { %v1266_v39 = vmul.f32 1.442695, %v1265_v24 }
 0xb9a   :  { %v2225_v40 = vpop.permute.xlu1 %2224 }
 0xb9b   :  { %2268 = vpow2.f32 %v1266_v39  ;;  %v2227_v41 = vunpack.i.h.bf16 %v2225_v40  ;;  %v2226_v42 = vunpack.i.l.bf16 %v2225_v40 }
 0xb9d   :  { %v2133_v43 = vpack.c.bf16 %v2227_v41, %v2226_v42 }
 0xb9e   :  { %v2230_v51 = vpop.permute.xlu1 %2229 }
 0xb9f   :  { %2134 = vmatpush3.bf16.msra.mxu1 %v2133_v43  ;;  %v2232_v53 = vunpack.i.h.bf16 %v2230_v51  ;;  %v2231_v54 = vunpack.i.l.bf16 %v2230_v51 }
 0xba0   :  { %2135 = vmatprep.subr.bf16.mxu1 %v2452_v16 }
 0xba1   :  { %v2136_v57 = vpack.c.bf16 %v2232_v53, %v2231_v54 }
 0xba2   :  { %v1354_v59 = vpop.permute.xlu1 %1353 }
 0xba5   :  { %v2269_v45 = vpop.eup %2268 }
 0xba6   :  { %v1268_v46 = vsel %vm383_vm4, %v2269_v45, 0.0 }
 0xba7   :  { %1269 = vadd.xlane.f32.xlu0 %v1268_v46  ;;  %v1715_v46 = vld [vmem:[#allocation11 + $0x8] sm:$0xff] }
 0xbbd   :  { %2234 = vrot.lane.b32.xlu0 %v2693_v10, %s2459_s21 }
 0xc34   :  { %v1270_v47 = vpop.xlane.xlu0 %1269 }
 0xc35   :  { %2270 = vrcp.f32 %v1270_v47  ;;  %v1716_v47 = vld [vmem:[#allocation11 + $0x10] sm:$0xff] }
 0xc38   :  { %v2235_v48 = vpop.permute.xlu0 %2234 }
 0xc39   :  { %v2237_v49 = vunpack.i.h.bf16 %v2235_v48  ;;  %v2236_v50 = vunpack.i.l.bf16 %v2235_v48 }
 0xc3b   :  { %v2140_v52 = vpack.c.bf16 %v2237_v49, %v2236_v50  ;;  %v1717_v49 = vld [vmem:[#allocation11 + $0x18] sm:$0xff] }
 0xc3c   :  { %v2153_v50 = vpack.c.bf16 %v1717_v49, %v1716_v47 }
 0xc3d   :  { %2141 = vmatpush3.bf16.msra.mxu0 %v2140_v52 }
 0xc3e   :  { %2142 = vmatprep.subr.bf16.mxu0 %v2452_v16 }
 0xc3f   :  { %v2271_v55 = vpop.eup %2270 }
 0xc40   :  { %v1272_v56 = vmul.f32 %v2271_v55, %v2269_v45 }
 0xc42   :  { %v1273_v58 = vsel %vm115_vm6, 0.0, %v1272_v56 }
 0xc43   :  { %2036 = vmatmul.mubr.msk.f32.vlgmr.msra.gmra.mrb[14].mxu1 %vm383_vm4, %v1273_v58 }
 0xc44   :  { %2138 = vmatpush3.bf16.xpose.msk.msra.mxu1 %vm2621_vm3, %v2136_v57  ;;  %2042 = vmatprep.mubr.msk.f32.mxu1 %vm2453_vm1, %v2454_v17 }
 0xc45   :  { %2146 = vmatprep.subr.bf16.mxu1 %v2452_v16 }
 0xc4b   :  { %2043 = vmatmul.mubr.msk.f32.vlgmr.msra.gmra.mrb[16].mxu1 %vm303_vm2, %v1354_v59 }
 0xc4c   :  { %2063 = vmatprep.mubr.msk.f32.mxu1 %vm2453_vm1, %v2454_v17 }
 0xd16   :  { %v1349_v60 = vpop.f32.mrb[14].mxu1 }
 0xd17   :  { %v2037_v61 = vpop.f32.mrb[15].mxu1 }
 0xd1e   :  { %v1431_v62 = vpop.f32.mrb[16].mxu1 }
 0xd1f   :  { %v1432_v1 = vadd.f32 %v1431_v62, %v2750_v5  ;;  %v2044_v2 = vpop.f32.mrb[17].mxu1 }
 0xd21   :  { %v1435_v3 = vsel %vm383_vm4, %v1432_v1, -inf }
 0xd22   :  { %1436 = vmax.xlane.f32.xlu1 %v1435_v3 }
 0xdaf   :  { %v1437_v4 = vpop.xlane.xlu1 %1436 }
 0xdb0   :  { %v1438_v30 = vsub.f32 %v1432_v1, %v1437_v4 }
 0xdb2   :  { %v1439_v6 = vmul.f32 1.442695, %v1438_v30 }
 0xdb4   :  { %2272 = vpow2.f32 %v1439_v6 }
 0xdbe   :  { %v2273_v16 = vpop.eup %2272 }
 0xdbf   :  { %v1441_v7 = vsel %vm383_vm4, %v2273_v16, 0.0 }
 0xdc0   :  { %1442 = vadd.xlane.f32.xlu0 %v1441_v7 }
 0xdd6   :  { %2239 = vrot.lane.b32.xlu0 %v2693_v10, %s2460_s22 }
 0xdda   :  { %1526 = vrot.lane.b32.xlu0 %v2627_v23, %s2460_s22 }
 0xe4d   :  { %v1443_v63 = vpop.xlane.xlu0 %1442 }
 0xe4e   :  { %2274 = vrcp.f32 %v1443_v63 }
 0xe51   :  { %v2240_v0 = vpop.permute.xlu0 %2239 }
 0xe52   :  { %v2242_v8 = vunpack.i.h.bf16 %v2240_v0  ;;  %v2241_v9 = vunpack.i.l.bf16 %v2240_v0 }
 0xe54   :  { %v2143_v15 = vpack.c.bf16 %v2242_v8, %v2241_v9 }
 0xe55   :  { %v1527_v23 = vpop.permute.xlu0 %1526 }
 0xe58   :  { %v2275_v11 = vpop.eup %2274 }
 0xe59   :  { %v1445_v13 = vmul.f32 %v2275_v11, %v2273_v16 }
 0xe5b   :  { %v1446_v18 = vsel %vm115_vm6, 0.0, %v1445_v13 }
 0xe5c   :  { %2050 = vmatmul.mubr.msk.f32.vlgmr.msra.gmra.mrb[14].mxu0 %vm383_vm4, %v1446_v18 }
 0xe5d   :  { %2145 = vmatpush3.bf16.xpose.msk.msra.mxu0 %vm2621_vm3, %v2143_v15  ;;  %2056 = vmatprep.mubr.msk.f32.mxu0 %vm2453_vm1, %v2454_v17 }
 0xe64   :  { %2057 = vmatmul.mubr.msk.f32.vlgmr.msra.gmra.mrb[16].mxu0 %vm303_vm2, %v1527_v23 }
 0xf2f   :  { %v1522_v19 = vpop.f32.mrb[14].mxu0 }
 0xf30   :  { %v2051_v22 = vpop.f32.mrb[15].mxu0 }
 0xf37   :  { %v1604_v25 = vpop.f32.mrb[16].mxu0 }
 0xf38   :  { %v1605_v26 = vadd.f32 %v1604_v25, %v2750_v5  ;;  %v2058_v27 = vpop.f32.mrb[17].mxu0 }
 0xf3a   :  { %v1608_v28 = vsel %vm383_vm4, %v1605_v26, -inf }
 0xf3b   :  { %1609 = vmax.xlane.f32.xlu1 %v1608_v28 }
 0xf4c   :  { %2244 = vrot.lane.b32.xlu1 %v2693_v10, %s2461_s23 }
 0xf50   :  { %995 = vrot.lane.b32.xlu1 %v2699_v14, %s2447_s10 }
 0xf54   :  { %999 = vrot.lane.b32.xlu1 %v2722_v44, %s2462_s25 }
 0xf58   :  { %1700 = vrot.lane.b32.xlu1 %v1349_v60, %s2447_s10 }
 0xf5c   :  { %1003 = vrot.lane.b32.xlu1 %v2748_v21, %s2463_s27 }
 0xfc8   :  { %v1610_v17 = vpop.xlane.xlu1 %1609 }
 0xfc9   :  { %v1611_v20 = vsub.f32 %v1605_v26, %v1610_v17 }
 0xfcb   :  { %v1612_v29 = vmul.f32 1.442695, %v1611_v20 }
 0xfcc   :  { %v2245_v31 = vpop.permute.xlu1 %2244 }
 0xfcd   :  { %2276 = vpow2.f32 %v1612_v29  ;;  %v2247_v33 = vunpack.i.h.bf16 %v2245_v31  ;;  %v2246_v34 = vunpack.i.l.bf16 %v2245_v31 }
 0xfcf   :  { %v2147_v10 = vpack.c.bf16 %v2247_v33, %v2246_v34 }
 0xfd0   :  { %v996_v35 = vpop.permute.xlu1 %995 }
 0xfd1   :  { %2148 = vmatpush3.bf16.msra.mxu1 %v2147_v10  ;;  %v1006_v41 = vsel %vm303_vm2, %v2697_v12, %v996_v35 }
 0xfd4   :  { %v1000_v14 = vpop.permute.xlu1 %999 }
 0xfd5   :  { %v1007_v42 = vsel %vm383_vm4, %v1006_v41, %v1000_v14 }
 0xfd7   :  { %v2277_v36 = vpop.eup %2276 }
 0xfd8   :  { %v1701_v37 = vpop.permute.xlu1 %1700  ;;  %v1614_v44 = vsel %vm383_vm4, %v2277_v36, 0.0 }
 0xfd9   :  { %v1711_v38 = vsel %vm303_vm2, %v2771_v32, %v1701_v37  ;;  %1615 = vadd.xlane.f32.xlu0 %v1614_v44  ;;  %v1714_v32 = vld [vmem:[#allocation11] sm:$0xff] }
 0xfda   :  { %v2149_v48 = vpack.c.bf16 %v1715_v46, %v1714_v32 }
 0xfdc   :  { %v1004_v39 = vpop.permute.xlu1 %1003  ;;  %2150 = vmatprep.subr.bf16.mxu1 %v2149_v48 }
 0xfdd   :  { %v1009_v45 = vsel %vm1008_vm7, %v1007_v42, %v1004_v39 }
 0xfef   :  { %1704 = vrot.lane.b32.xlu0 %v1522_v19, %s2462_s25 }
0x1066   :  { %v1616_v21 = vpop.xlane.xlu0 %1615 }
0x1067   :  { %2278 = vrcp.f32 %v1616_v21 }
0x106a   :  { %v1705_v51 = vpop.permute.xlu0 %1704 }
0x106b   :  { %v1712_v52 = vsel %vm383_vm4, %v1711_v38, %v1705_v51 }
0x1071   :  { %v2279_v24 = vpop.eup %2278 }
0x1072   :  { %v1618_v40 = vmul.f32 %v2279_v24, %v2277_v36 }
0x1074   :  { %v1619_v43 = vsel %vm115_vm6, 0.0, %v1618_v40 }
0x1075   :  { %2064 = vmatmul.mubr.msk.f32.vlgmr.msra.gmra.mrb[18].mxu1 %vm383_vm4, %v1619_v43 }
0x1076   :  { %2074 = vmatprep.mubr.msk.f32.mxu1 %vm120_vm0, %v1009_v45  ;;  %2152 = vmatpush3.bf16.msra.mxu1 %v2149_v48 }
0x1077   :  { %2154 = vmatprep.subr.bf16.mxu1 %v2153_v50 }
0x107a   :  { %2156 = vmatpush3.bf16.msra.mxu1 %v2153_v50 }
0x1148   :  { %v1695_v12 = vpop.f32.mrb[18].mxu1 }
0x1149   :  { %1708 = vrot.lane.b32.xlu1 %v1695_v12, %s2463_s27  ;;  %v2065_v5 = vpop.f32.mrb[19].mxu1 }
0x11bb   :  { %v1709_v53 = vpop.permute.xlu1 %1708 }
0x11bc   :  { %v1713_v54 = vsel %vm1008_vm7, %v1712_v52, %v1709_v53 }
0x11bd   :  { %2075 = vmatmul.mubr.msk.f32.vlgmr.msra.gmra.mrb[20].mxu1 %vm120_vm0, %v1713_v54 }
0x1290   :  { %v2076_v55 = vpop.f32.mrb[20].mxu1 }
0x1291   :  { %1800 = vst.msk [vmem:[#allocation13 + $0x8] sm:$0xff] %vm120_vm0, %v2076_v55  ;;  %v1790_v56 = vpop.f32.mrb[21].mxu1 }
0x1292   :  { %1799 = vst.msk [vmem:[#allocation13] sm:$0xff] %vm120_vm0, %v1790_v56 }
0x1293   :  { %2423 = shalt.err (!%p2420_p10)
}
0x1294   :  { %s2424_s11 = scalar_lea.hbm %s2860_s6, 256 }
0x1295   :  { %p2425_p11 = scmp.ne.s32.totalorder %s2860_s6, %s2424_s11  ;;  %p2428_p12 = scmp.lt.u32.totalorder %s2424_s11, %s2860_s6 }
0x1297   :  { %p2430_p13 = pnand %p2428_p12, %p2425_p11 }
0x1299   :  { %2433 = shalt.err (!%p2430_p13)
}
0x129a   :  { %1812 = dma.vmem_to_hbm [thread:$0]  %s1807_s29, 256, %s2860_s6, [#allocation4], %s2446_s9, %s2446_s9, %s2447_s10  }
0x129b   :  { %2442 = dma.done.wait [#allocation4], 256  }
0x129c   :  { %2443 = vsyncadd [#allocation4], 4294967040 }
0x129d   :  { %1816 = vsyncpa [#allocation3], 1 }
0x129e   :  { %1817 = vsyncpa [#allocation6], 1 }
0x129f   :  { %1818 = vsyncpa [#allocation9], 1 }
0x12a0   :  { %1819 = vsyncpa [#allocation12], 1 }
0x12a1   :  { %1820 = vsyncpa [#allocation4], 1 }

</bundles_post_ra>
